<compile_context>
chip_gen: v5e
topology: v5e:2x2
jax: 0.10.0
libtpu: 0.0.40
codegen_flags: <defaults>
</compile_context>

<pallas_src>
import jax
import jax.numpy as jnp
from jax import lax
from jax.experimental import pallas as pl
from jax.experimental.pallas import tpu as pltpu


def _masked_head_kernel(x_ref, w_ref, o_ref):
    # x_ref : (Bb, T, E) bf16    w_ref : (3, E, H) bf16    o_ref : (Bb, T, H)
    Bb, T, E = x_ref.shape
    H = w_ref.shape[2]

    # Leading-dim merge only (last dim unchanged) -> free view; T is padded to
    # a multiple of 8 in the wrapper so this never crosses a tile boundary.
    x2d = x_ref[...].reshape(Bb * T, E)

    # Three small dots (K = E) against the resident x block. Softmax scale is
    # already folded into w_ref[0] (the Wq columns) by the wrapper.
    q = jnp.dot(x2d, w_ref[0], preferred_element_type=jnp.float32).reshape(Bb, T, H)
    k = jnp.dot(x2d, w_ref[1], preferred_element_type=jnp.float32).reshape(Bb, T, H)
    v = jnp.dot(x2d, w_ref[2], preferred_element_type=jnp.float32).reshape(Bb, T, H)

    # scores[b, t, s] = sum_h q[b,t,h] * k[b,s,h]  (contract on H; no k.T materialized)
    scores = jnp.einsum(
        "bth,bsh->bts",
        q.astype(jnp.bfloat16),
        k.astype(jnp.bfloat16),
        preferred_element_type=jnp.float32,
    )                                    # (Bb, T, T) f32

    # Single 2D causal mask, broadcast over the batch block; finite fill value.
    row = lax.broadcasted_iota(jnp.int32, (T, T), 0)
    col = lax.broadcasted_iota(jnp.int32, (T, T), 1)
    causal = col <= row
    scores = jnp.where(causal[None, :, :], scores, jnp.float32(-1e30))

    # Softmax in f32; reciprocal on the EUP (approx) — effectively a free slot.
    m = jnp.max(scores, axis=-1, keepdims=True)
    p = jnp.exp(scores - m)
    denom = jnp.sum(p, axis=-1, keepdims=True)
    attn = p * pl.reciprocal(denom, approx=True)

    out = jnp.einsum(
        "bts,bsh->bth",
        attn.astype(jnp.bfloat16),
        v.astype(jnp.bfloat16),
        preferred_element_type=jnp.float32,
    )                                    # (Bb, T, H)
    o_ref[...] = out.astype(o_ref.dtype)


def masked_attention_head(x, wq, wk, wv, *, batch_block=None, num_tensorcores=None,
                          vmem_budget_bytes=24 * 1024 * 1024):
    """x: (B, T, E); wq/wk/wv: (head_size, E) PyTorch-style. Returns (B, T, head_size)."""
    B, T, E = x.shape
    H = wq.shape[0]
    scale = float(H) ** -0.5
    out_dtype = x.dtype

    # Keep seq a multiple of 8 so in-kernel leading-dim reshapes stay free views.
    # Zero-padded key rows are never attended by real query rows (causal mask),
    # and padded query rows are sliced off below.
    Tp = ((T + 7) // 8) * 8
    xp = x if Tp == T else jnp.pad(x, ((0, 0), (0, Tp - T), (0, 0)))
    x_bf = xp.astype(jnp.bfloat16)

    # One-time weight transform: fold the softmax scale into Wq, pre-transpose
    # each projection to (E, H), stack along a leading axis so the kernel never
    # slices a <128-lane fused result.
    w_qkv = jnp.stack([wq * scale, wk, wv], axis=0)          # (3, H, E)
    w_qkv = jnp.transpose(w_qkv, (0, 2, 1)).astype(jnp.bfloat16)  # (3, E, H)

    # ---- batch-block selection ------------------------------------------
    if num_tensorcores is None:
        # v5e/v6e: 1 TC per chip; v7x exposes 2 (fallback to 1 if not queryable).
        num_tensorcores = getattr(jax.devices()[0], "num_cores", 1) or 1

    out_itemsize = jnp.dtype(out_dtype).itemsize

    def vmem_bytes(bblk):
        x_b = 2 * bblk * Tp * E * 2                 # x, bf16, double-buffered
        o_b = 2 * bblk * Tp * H * out_itemsize      # out, double-buffered
        w_b = 2 * 3 * E * H * 2                     # weights (resident, dbl-buffered)
        qkv_b = 3 * bblk * Tp * H * 4               # q / k / v in f32
        s_b = 2 * bblk * Tp * Tp * 4                # scores + p in f32 (dominant term)
        return x_b + o_b + w_b + qkv_b + s_b

    # Multi-TC (v7x): keep >= num_tensorcores grid steps so the "parallel" batch
    # axis actually shards; single-TC (v5e/v6e): maximize the block for MXU row
    # fill and fewer serial grid-step overheads. Always use a divisor of B so no
    # padded batch rows are ever computed.
    tc_cap = -(-B // num_tensorcores) if num_tensorcores > 1 else B
    cap = max(1, min(B, tc_cap, batch_block if batch_block else B))
    bblk = 1
    for d in range(cap, 0, -1):
        if B % d == 0 and vmem_bytes(d) <= vmem_budget_bytes:
            bblk = d
            break
    grid = (B // bblk,)

    # Explicit limit (v5e default is only 16 MiB); cap at 48 MiB to stay safe on
    # v7x's 64 MiB physical VMEM.
    vmem_limit = int(min(max(32 * 1024 * 1024, 2 * vmem_bytes(bblk)),
                         48 * 1024 * 1024))

    out = pl.pallas_call(
        _masked_head_kernel,
        out_shape=jax.ShapeDtypeStruct((B, Tp, H), out_dtype),
        grid_spec=pltpu.PrefetchScalarGridSpec(
            num_scalar_prefetch=0,
            grid=grid,
            in_specs=[
                pl.BlockSpec((bblk, Tp, E), lambda b: (b, 0, 0)),   # batch block of x
                pl.BlockSpec((3, E, H), lambda b: (0, 0, 0)),       # stacked Q/K/V weights
            ],
            out_specs=pl.BlockSpec((bblk, Tp, H), lambda b: (b, 0, 0)),
        ),
        compiler_params=pltpu.CompilerParams(
            dimension_semantics=("parallel",),
            vmem_limit_bytes=vmem_limit,
        ),
    )(x_bf, w_qkv)

    return out if Tp == T else out[:, :T, :]


def _reference(x, wq, wk, wv):
    q = jnp.einsum("bte,he->bth", x, wq)
    k = jnp.einsum("bte,he->bth", x, wk)
    v = jnp.einsum("bte,he->bth", x, wv)
    H = wq.shape[0]
    scores = jnp.einsum("bth,bsh->bts", q, k) * (H ** -0.5)
    T = x.shape[1]
    mask = jnp.tril(jnp.ones((T, T), dtype=bool))
    scores = jnp.where(mask[None], scores, -jnp.inf)
    attn = jax.nn.softmax(scores, axis=-1)
    return jnp.einsum("bts,bsh->bth", attn, v)


if __name__ == "__main__":
    # ModelArgs-equivalent small config: embeddings_dims=32, no_of_heads=4
    batch, block_size, embeddings_dims, no_of_heads = 2, 8, 32, 4
    head_size = embeddings_dims // no_of_heads

    key = jax.random.PRNGKey(0)
    kx, kq, kk, kv = jax.random.split(key, 4)
    x = jax.random.normal(kx, (batch, block_size, embeddings_dims), jnp.float32)
    # nn.Linear-style weights: [out_features, in_features], no bias.
    wscale = embeddings_dims ** -0.5
    wq = jax.random.uniform(kq, (head_size, embeddings_dims), jnp.float32,
                            -wscale, wscale)
    wk = jax.random.uniform(kk, (head_size, embeddings_dims), jnp.float32,
                            -wscale, wscale)
    wv = jax.random.uniform(kv, (head_size, embeddings_dims), jnp.float32,
                            -wscale, wscale)

    out = masked_attention_head(x, wq, wk, wv)
    jax.block_until_ready(out)

    ref = _reference(x, wq, wk, wv)
    assert out.shape == (batch, block_size, head_size)
    # bf16 MXU inputs (f32 accumulation) + approx reciprocal => bf16-level tolerance
    # vs. the f32 reference.
    assert jnp.allclose(out, ref, atol=5e-2, rtol=5e-2), float(
        jnp.max(jnp.abs(out - ref)))

    print("KERNEL_OK")
</pallas_src>

<mosaic_0001>
module attributes {stable_mosaic.version = 11 : i64} {
  func.func @_masked_head_kernel(%arg0: i32, %arg1: memref<2x8x32xbf16, #tpu.memory_space<vmem>>, %arg2: memref<3x32x8xbf16, #tpu.memory_space<vmem>>, %arg3: memref<2x8x8xf32, #tpu.memory_space<vmem>>) attributes {dimension_semantics = [#tpu.dimension_semantics<parallel>], iteration_bounds = array<i64: 1>, scalar_prefetch = 0 : i64, scratch_operands = 0 : i64, tpu.core_type = #tpu.core_type<tc>, window_params = [{transform_indices = @transform_0, window_bounds = array<i64: 2, 8, 32>}, {pipeline_mode = #tpu.pipeline_mode<synchronous>, transform_indices = @transform_1, window_bounds = array<i64: 3, 32, 8>}, {transform_indices = @transform_2, window_bounds = array<i64: 2, 8, 8>}]} {
    %c0 = arith.constant 0 : index
    %c0_0 = arith.constant 0 : index
    %c0_1 = arith.constant 0 : index
    %0 = vector.load %arg1[%c0, %c0_0, %c0_1] : memref<2x8x32xbf16, #tpu.memory_space<vmem>>, vector<2x8x32xbf16>
    %1 = vector.shape_cast %0 : vector<2x8x32xbf16> to vector<16x32xbf16>
    %c0_2 = arith.constant 0 : index
    %c0_3 = arith.constant 0 : index
    %c0_4 = arith.constant 0 : index
    %2 = vector.load %arg2[%c0_2, %c0_3, %c0_4] : memref<3x32x8xbf16, #tpu.memory_space<vmem>>, vector<1x32x8xbf16>
    %3 = vector.shape_cast %2 : vector<1x32x8xbf16> to vector<32x8xbf16>
    %cst = arith.constant dense<0.000000e+00> : vector<16x8xf32>
    %4 = tpu.matmul %1, %3, %cst {dimension_numbers = #tpu.dot_dimension_numbers<[1], [0], [0], [1], [0, 0, 1, 1], [], []>} : vector<16x32xbf16>, vector<32x8xbf16>, vector<16x8xf32> -> vector<16x8xf32>
    %5 = vector.shape_cast %4 : vector<16x8xf32> to vector<2x8x8xf32>
    %c1 = arith.constant 1 : index
    %c0_5 = arith.constant 0 : index
    %c0_6 = arith.constant 0 : index
    %6 = vector.load %arg2[%c1, %c0_5, %c0_6] : memref<3x32x8xbf16, #tpu.memory_space<vmem>>, vector<1x32x8xbf16>
    %7 = vector.shape_cast %6 : vector<1x32x8xbf16> to vector<32x8xbf16>
    %cst_7 = arith.constant dense<0.000000e+00> : vector<16x8xf32>
    %8 = tpu.matmul %1, %7, %cst_7 {dimension_numbers = #tpu.dot_dimension_numbers<[1], [0], [0], [1], [0, 0, 1, 1], [], []>} : vector<16x32xbf16>, vector<32x8xbf16>, vector<16x8xf32> -> vector<16x8xf32>
    %9 = vector.shape_cast %8 : vector<16x8xf32> to vector<2x8x8xf32>
    %c2 = arith.constant 2 : index
    %c0_8 = arith.constant 0 : index
    %c0_9 = arith.constant 0 : index
    %10 = vector.load %arg2[%c2, %c0_8, %c0_9] : memref<3x32x8xbf16, #tpu.memory_space<vmem>>, vector<1x32x8xbf16>
    %11 = vector.shape_cast %10 : vector<1x32x8xbf16> to vector<32x8xbf16>
    %cst_10 = arith.constant dense<0.000000e+00> : vector<16x8xf32>
    %12 = tpu.matmul %1, %11, %cst_10 {dimension_numbers = #tpu.dot_dimension_numbers<[1], [0], [0], [1], [0, 0, 1, 1], [], []>} : vector<16x32xbf16>, vector<32x8xbf16>, vector<16x8xf32> -> vector<16x8xf32>
    %13 = vector.shape_cast %12 : vector<16x8xf32> to vector<2x8x8xf32>
    %14 = arith.truncf %5 : vector<2x8x8xf32> to vector<2x8x8xbf16>
    %15 = arith.truncf %9 : vector<2x8x8xf32> to vector<2x8x8xbf16>
    "tpu.trace_start"() <{level = 10 : i32, message = "bth,bsh->bts"}> : () -> ()
    %cst_11 = arith.constant dense<0.000000e+00> : vector<2x8x8xf32>
    %16 = tpu.matmul %14, %15, %cst_11 {dimension_numbers = #tpu.dot_dimension_numbers<[2], [2], [1], [1], [0, 0, 0, 1, 1, 1], [0], [0]>} : vector<2x8x8xbf16>, vector<2x8x8xbf16>, vector<2x8x8xf32> -> vector<2x8x8xf32>
    "tpu.trace_stop"() : () -> ()
    %17 = tpu.iota {dimensions = array<i32: 0>} : vector<8x8xi32>
    %18 = tpu.iota {dimensions = array<i32: 1>} : vector<8x8xi32>
    %19 = arith.cmpi sle, %18, %17 : vector<8x8xi32>
    %20 = vector.shape_cast %19 : vector<8x8xi1> to vector<1x8x8xi1>
    %cst_12 = arith.constant -1.000000e+30 : f32
    %21 = vector.shape_cast %20 : vector<1x8x8xi1> to vector<1x8x8xi1>
    %22 = vector.broadcast %21 : vector<1x8x8xi1> to vector<2x8x8xi1>
    %23 = vector.broadcast %cst_12 : f32 to vector<2x8x8xf32>
    %24 = arith.select %22, %16, %23 : vector<2x8x8xi1>, vector<2x8x8xf32>
    %cst_13 = arith.constant dense<0xFF800000> : vector<2x8xf32>
    %25 = vector.multi_reduction <maximumf>, %24, %cst_13 [2] : vector<2x8x8xf32> to vector<2x8xf32>
    %26 = vector.shape_cast %25 : vector<2x8xf32> to vector<2x8x1xf32>
    %27 = vector.broadcast %26 : vector<2x8x1xf32> to vector<2x8x8xf32>
    %28 = arith.subf %24, %27 : vector<2x8x8xf32>
    %29 = math.exp %28 : vector<2x8x8xf32>
    %cst_14 = arith.constant dense<0.000000e+00> : vector<2x8xf32>
    %30 = vector.multi_reduction <add>, %29, %cst_14 [2] : vector<2x8x8xf32> to vector<2x8xf32>
    %31 = vector.shape_cast %30 : vector<2x8xf32> to vector<2x8x1xf32>
    %32 = tpu.reciprocal %31 {approx = true} : vector<2x8x1xf32> -> vector<2x8x1xf32>
    %33 = vector.broadcast %32 : vector<2x8x1xf32> to vector<2x8x8xf32>
    %34 = arith.mulf %29, %33 : vector<2x8x8xf32>
    %35 = arith.truncf %34 : vector<2x8x8xf32> to vector<2x8x8xbf16>
    %36 = arith.truncf %13 : vector<2x8x8xf32> to vector<2x8x8xbf16>
    "tpu.trace_start"() <{level = 10 : i32, message = "bts,bsh->bth"}> : () -> ()
    %cst_15 = arith.constant dense<0.000000e+00> : vector<2x8x8xf32>
    %37 = tpu.matmul %35, %36, %cst_15 {dimension_numbers = #tpu.dot_dimension_numbers<[2], [1], [1], [2], [0, 0, 0, 1, 1, 2], [0], [0]>} : vector<2x8x8xbf16>, vector<2x8x8xbf16>, vector<2x8x8xf32> -> vector<2x8x8xf32>
    "tpu.trace_stop"() : () -> ()
    %c0_16 = arith.constant 0 : index
    %c0_17 = arith.constant 0 : index
    %c0_18 = arith.constant 0 : index
    %38 = vector.load %arg3[%c0_16, %c0_17, %c0_18] : memref<2x8x8xf32, #tpu.memory_space<vmem>>, vector<2x8x8xf32>
    tpu.vector_store %arg3[%c0_16, %c0_17, %c0_18], %37 {strides = array<i32>} : memref<2x8x8xf32, #tpu.memory_space<vmem>>, vector<2x8x8xf32>,
    return
  }
  func.func @transform_0(%arg0: i32) -> (i32, i32, i32) {
    %c0_i32 = arith.constant 0 : i32
    %c0_i32_0 = arith.constant 0 : i32
    %c0_i32_1 = arith.constant 0 : i32
    return %arg0, %c0_i32, %c0_i32_0 : i32, i32, i32
  }
  func.func @transform_1(%arg0: i32) -> (i32, i32, i32) {
    %c0_i32 = arith.constant 0 : i32
    %c0_i32_0 = arith.constant 0 : i32
    %c0_i32_1 = arith.constant 0 : i32
    %c0_i32_2 = arith.constant 0 : i32
    return %c0_i32, %c0_i32_0, %c0_i32_1 : i32, i32, i32
  }
  func.func @transform_2(%arg0: i32) -> (i32, i32, i32) {
    %c0_i32 = arith.constant 0 : i32
    %c0_i32_0 = arith.constant 0 : i32
    %c0_i32_1 = arith.constant 0 : i32
    return %arg0, %c0_i32, %c0_i32_0 : i32, i32, i32
  }
}

</mosaic_0001>

<bundles_post_ra>
// kernel: tpu_custom_call.1
= control target key start
LH: loop header
LB: loop body
LE: loop exit
PB: predicated region body
PF: predicated region fallthrough
CT: control target
= control target key end

     0   :  { %s397_s0 = inlined_call_operand.vmem [shape: bf16[2,8,32], index: 0, kind: input, shape index: {}]   ;;  %s398_s1 = inlined_call_operand.vmem [shape: bf16[3,32,8], index: 1, kind: input, shape index: {}]   ;;  %s399_s2 = inlined_call_operand.hbm [shape: f32[2,8,8], index: 2, kind: output, shape index: {}]  }
   0x1   :  { %v300_v0 = vld [vmem:[%s398_s1 + $0x18] sm:$0xff]  ;;  %v298_v1 = vld [vmem:[%s398_s1 + $0x8] sm:$0xff] }
   0x2   :  { %7 = vsyncpa [#allocation3], 0  ;;  %77 = vmatpush.bf16.msra.mxu1 %v300_v0  ;;  %v299_v2 = vld [vmem:[%s398_s1 + $0x10] sm:$0xff]  ;;  %46 = vmatpush.bf16.msra.mxu0 %v298_v1  ;;  %v297_v3 = vld [vmem:[%s398_s1] sm:$0xff]  ;;  %vm36_vm0 = vcmask 261120   ;;  %vm120_vm1 = vcmask 64512   ;;  %v159_v17 = vlaneseq }
   0x3   :  { %v296_v4 = vld [vmem:[%s397_s0] sm:$0xff]  ;;  %v302_v15 = vld [vmem:[%s398_s1 + $0x28] sm:$0xff]  ;;  %vm197_vm3 = vcmask 1043456   ;;  %s241_s25 = sshll.u32 %s399_s2, 4  ;;  %s341_s26 = smov 128   ;;  %s242_s25 = int_to_ptr.hbm [resolvable:$true] %s241_s25 }
   0x4   :  { %108 = vmatpush.bf16.msra.mxu2 %v302_v15  ;;  %v301_v16 = vld [vmem:[%s398_s1 + $0x20] sm:$0xff]  ;;  %v160_v18 = vshrl.u32 %v159_v17, 7  ;;  %v162_v19 = vand.u32 127, %v159_v17  ;;  %s340_s1 = smov [#allocation2]   ;;  %s342_s27 = smov 8  }
   0x5   :  { %s239_s22 = sshll.u32 %s340_s1, 4  ;;  %s240_s22 = int_to_ptr.vmem [resolvable:$true] %s239_s22 }
   0x6   :  { %78 = vmatpush.bf16.msra.mxu1 %v299_v2  ;;  %47 = vmatpush.bf16.msra.mxu0 %v297_v3  ;;  %vm163_vm2 = vcmp.le.s32.totalorder %v162_v19, %v160_v18 }
   0x8   :  { %109 = vmatpush.bf16.msra.mxu2 %v301_v16 }
   0x9   :  { %278 = vmatmul.msk.bf16.vlgmr.msra.gmra.mxu1 %vm36_vm0, %v296_v4  ;;  %265 = vmatmul.msk.bf16.vlgmr.msra.gmra.mxu0 %vm36_vm0, %v296_v4 }
   0xb   :  { %291 = vmatmul.msk.bf16.vlgmr.msra.gmra.mxu2 %vm36_vm0, %v296_v4 }
  0x86   :  { %v80_v5 = vpop.f32.mrf.mxu1  ;;  %v49_v8 = vpop.f32.mrf.mxu0 }
  0x87   :  { %v118_v6 = vpack.c.bf16 %v80_v5, %v80_v5  ;;  %v116_v9 = vpack.c.bf16 %v49_v8, %v49_v8 }
  0x89   :  { %v125_v7 = vsel %vm120_vm1, %v118_v6, 0 }
  0x8a   :  { %134 = vmatpush.bf16.xpose.msra.mxu3 %v125_v7 }
  0x8e   :  { %v82_v10 = vpop.f32.mrf.mxu1  ;;  %v51_v13 = vpop.f32.mrf.mxu0 }
  0x8f   :  { %v119_v11 = vpack.c.bf16 %v82_v10, %v82_v10  ;;  %v117_v14 = vpack.c.bf16 %v51_v13, %v51_v13  ;;  %v111_v30 = vpop.f32.mrf.mxu2 }
  0x90   :  { %v192_v31 = vpack.c.bf16 %v111_v30, %v111_v30 }
  0x91   :  { %292 = vmatmul.msk.bf16.vlgmr.msra.gmra.mxu3 %vm120_vm1, %v116_v9  ;;  %v144_v12 = vsel %vm120_vm1, %v119_v11, 0 }
  0x92   :  { %153 = vmatpush.bf16.xpose.msrb.mxu0 %v144_v12  ;;  %v199_v33 = vsel %vm197_vm3, %v192_v31, 0 }
  0x93   :  { %208 = vmatpush.bf16.msrb.mxu1 %v199_v33 }
  0x97   :  { %v113_v36 = vpop.f32.mrf.mxu2 }
  0x98   :  { %v193_v37 = vpack.c.bf16 %v113_v36, %v113_v36 }
  0x99   :  { %293 = vmatmul.msk.bf16.vlgmr.msrb.gmra.mxu0 %vm120_vm1, %v117_v14 }
  0x9a   :  { %v218_v41 = vsel %vm197_vm3, %v193_v37, 0 }
  0x9b   :  { %227 = vmatpush.bf16.msrb.mxu2 %v218_v41 }
 0x114   :  { %v136_v20 = vpop.f32.mrf.mxu3 }
 0x115   :  { %v166_v25 = vsel %vm163_vm2, %v136_v20, -1e+30 }
 0x116   :  { %v155_v21 = vpop.f32.mrf.mxu0  ;;  %v168_v27 = vsel %vm120_vm1, %v166_v25, -inf }
 0x117   :  { %v167_v22 = vsel %vm163_vm2, %v155_v21, -1e+30 }
 0x118   :  { %v171_v23 = vsel %vm120_vm1, %v167_v22, -inf }
 0x119   :  { %172 = vmax.xlane.f32.xlu0 %v171_v23 }
 0x11c   :  { %v138_v24 = vpop.f32.mrf.mxu3 }
 0x11e   :  { %v157_v26 = vpop.f32.mrf.mxu0 }
 0x121   :  { %169 = vmax.xlane.f32.xlu0 %v168_v27 }
 0x18c   :  { %v173_v28 = vpop.xlane.xlu0 %172 }
 0x18d   :  { %v175_v29 = vsub.f32 %v167_v22, %v173_v28 }
 0x18f   :  { %v178_v32 = vmul.f32 1.442695, %v175_v29 }
 0x191   :  { %306 = vpow2.f32 %v178_v32 }
 0x194   :  { %v170_v34 = vpop.xlane.xlu0 %169 }
 0x195   :  { %v174_v35 = vsub.f32 %v166_v25, %v170_v34 }
 0x197   :  { %v307_v38 = vpop.eup %306  ;;  %v176_v39 = vmul.f32 1.442695, %v174_v35 }
 0x198   :  { %v183_v40 = vsel %vm120_vm1, %v307_v38, 0.0 }
 0x199   :  { %308 = vpow2.f32 %v176_v39  ;;  %184 = vadd.xlane.f32.xlu1 %v183_v40 }
 0x19f   :  { %v309_v42 = vpop.eup %308 }
 0x1a0   :  { %v180_v43 = vsel %vm120_vm1, %v309_v42, 0.0 }
 0x1a1   :  { %181 = vadd.xlane.f32.xlu1 %v180_v43 }
 0x20c   :  { %v185_v44 = vpop.xlane.xlu1 %184 }
 0x20d   :  { %310 = vrcp.f32 %v185_v44 }
 0x213   :  { %v311_v45 = vpop.eup %310 }
 0x214   :  { %v189_v46 = vmul.f32 %v311_v45, %v307_v38  ;;  %v182_v47 = vpop.xlane.xlu1 %181 }
 0x215   :  { %312 = vrcp.f32 %v182_v47 }
 0x216   :  { %v191_v48 = vpack.c.bf16 %v189_v46, %v189_v46 }
 0x218   :  { %295 = vmatmul.msk.bf16.vlgmr.msrb.gmra.mxu2 %vm120_vm1, %v191_v48 }
 0x21b   :  { %v313_v49 = vpop.eup %312 }
 0x21c   :  { %v188_v50 = vmul.f32 %v313_v49, %v309_v42 }
 0x21e   :  { %v190_v51 = vpack.c.bf16 %v188_v50, %v188_v50 }
 0x220   :  { %294 = vmatmul.msk.bf16.vlgmr.msrb.gmra.mxu1 %vm120_vm1, %v190_v51 }
 0x29b   :  { %v229_v52 = vpop.f32.mrf.mxu2 }
 0x29c   :  { %234 = vst.msk [vmem:[#allocation2 + $0x8] sm:$0xff] %vm120_vm1, %v229_v52 }
 0x29d   :  { %v210_v53 = vpop.f32.mrf.mxu1 }
 0x29e   :  { %233 = vst.msk [vmem:[#allocation2] sm:$0xff] %vm120_vm1, %v210_v53 }
 0x29f   :  { %247 = dma.vmem_to_hbm [thread:$0]  %s240_s22, 256, %s242_s25, [#allocation3], %s341_s26, %s341_s26, %s342_s27  }
 0x2a3   :  { %v231_v54 = vpop.f32.mrf.mxu2 }
 0x2a5   :  { %v212_v55 = vpop.f32.mrf.mxu1 }
 0x2a6   :  { %338 = dma.done.wait [#allocation3], 256  }
 0x2a7   :  { %339 = vsyncadd [#allocation3], 4294967040 }
 0x2a8   :  { %252 = vsyncpa [#allocation3], 1 }

</bundles_post_ra>
